<compile_context>
chip_gen: v7x
topology: tpu7x:2x2x1
jax: 0.10.0
libtpu: 0.0.40
codegen_flags: <defaults>
</compile_context>

<pallas_src>
import functools

import jax
import jax.numpy as jnp
from jax.experimental import pallas as pl
from jax.experimental.pallas import tpu as pltpu


# ----------------------------------------------------------------------------
# Activation functions (pure jnp, evaluated INSIDE the Pallas kernel body)
# ----------------------------------------------------------------------------
def leaky_relu(x, negative_slope=0.01):
    return jnp.where(x >= 0, x, negative_slope * x)


def gelu_tanh(x):
    # F.gelu(x, approximate='tanh'); tanh lowers to the otherwise-idle EUP slot.
    return jax.nn.gelu(x, approximate=True)


def relu(x):
    return jnp.maximum(x, 0.0)


# ----------------------------------------------------------------------------
# Pallas kernel: apply the activation elementwise on one VMEM tile
# ----------------------------------------------------------------------------
def _activation_kernel(x_ref, o_ref, *, act_fn, act_kwargs):
    x = x_ref[...]
    # Compute sub-32-bit float activations in f32 (v5e VPU/EUP have no bf16 path).
    if jnp.issubdtype(x.dtype, jnp.floating) and jnp.dtype(x.dtype).itemsize < 4:
        y = act_fn(x.astype(jnp.float32), **dict(act_kwargs))
    else:
        y = act_fn(x, **dict(act_kwargs))
    o_ref[...] = y.astype(o_ref.dtype)


_SUBLANE, _LANE = 8, 128
# ~1 MiB per block -> ~4 MiB of VMEM with double-buffered in+out; comfortably
# under the default scoped-VMEM limit on v5e/v6e/v7x while being well past the
# block size where the HBM roofline is reached for a mem-bound elementwise op.
_TARGET_BLOCK_BYTES = 1 << 20


def _choose_width(n):
    """Widest lane-dense last dim (multiple of 128) dividing n exactly (no pad)."""
    for w in (2048, 1024, 512, 256, 128):
        if n % w == 0:
            return w
    return None


def _choose_block_rows(rows, width, itemsize):
    """Largest multiple of 8 dividing `rows` with block size <= target bytes."""
    bytes_per_row = width * itemsize
    cap = max(_SUBLANE, _TARGET_BLOCK_BYTES // bytes_per_row)
    best = None
    r = _SUBLANE
    limit = min(rows, cap)
    while r <= limit:
        if rows % r == 0:
            best = r
        r += _SUBLANE
    return best


@functools.partial(jax.jit, static_argnums=(1, 2))
def _apply_activation_pallas(x, act_fn, act_kwargs_items):
    """Flatten -> wide lane-dense slab (pad only if ragged) -> big-block kernel."""
    orig_shape = x.shape
    orig_dtype = x.dtype
    n = x.size
    itemsize = jnp.dtype(orig_dtype).itemsize

    if n == 0:
        # Degenerate empty tensor: nothing to compute.
        return x

    flat = x.reshape(-1)
    padded = False

    width = _choose_width(n)
    if width is None:
        # Ragged element count: pad only the tail up to one (8, 128) vreg tile.
        width = _LANE
        n_pad = pl.cdiv(n, _SUBLANE * _LANE) * (_SUBLANE * _LANE)
        flat = jnp.pad(flat, (0, n_pad - n))
        padded = True
    else:
        n_pad = n

    rows = n_pad // width

    block_rows = None
    if rows % _SUBLANE == 0:
        block_rows = _choose_block_rows(rows, width, itemsize)
    if block_rows is None:
        # rows is not a clean multiple of 8: use a single full-extent row block
        # if it fits VMEM, otherwise pad rows up to a multiple of 8.
        if rows * width * itemsize <= 4 * _TARGET_BLOCK_BYTES:
            block_rows = rows
        else:
            new_rows = pl.cdiv(rows, _SUBLANE) * _SUBLANE
            flat = jnp.pad(flat, (0, new_rows * width - n_pad))
            n_pad = new_rows * width
            rows = new_rows
            padded = True
            block_rows = _choose_block_rows(rows, width, itemsize) or _SUBLANE

    grid = (rows // block_rows,)
    x2d = flat.reshape(rows, width)

    kernel = functools.partial(
        _activation_kernel, act_fn=act_fn, act_kwargs=act_kwargs_items
    )

    out2d = pl.pallas_call(
        kernel,
        out_shape=jax.ShapeDtypeStruct((rows, width), orig_dtype),
        grid_spec=pltpu.PrefetchScalarGridSpec(
            num_scalar_prefetch=0,
            grid=grid,
            in_specs=[pl.BlockSpec((block_rows, width), lambda i: (i, 0))],
            out_specs=pl.BlockSpec((block_rows, width), lambda i: (i, 0)),
        ),
        input_output_aliases={0: 0},  # pure elementwise: reuse the input buffer
        compiler_params=pltpu.CompilerParams(
            dimension_semantics=("parallel",)
        ),
    )(x2d)

    if padded:
        return out2d.reshape(-1)[:n].reshape(orig_shape)
    return out2d.reshape(orig_shape)


# ----------------------------------------------------------------------------
# JAX/Pallas equivalent of the PyTorch ActivationFunction module
# ----------------------------------------------------------------------------
class ActivationFunction:
    """Mirrors: forward(x) = self.activation_function(x, **self.kwargs)."""

    def __init__(self, activation_function, **kwargs):
        self.activation_function = activation_function
        # Frozen (hashable) so the jitted wrapper can treat it as static.
        self.kwargs = tuple(sorted(kwargs.items()))

    def __call__(self, x):
        return _apply_activation_pallas(x, self.activation_function, self.kwargs)


# ----------------------------------------------------------------------------
# Demo / self-test
# ----------------------------------------------------------------------------
if __name__ == "__main__":
    key = jax.random.PRNGKey(0)
    # Small NCHW input consistent with a conv-style pipeline: (B=2, C=4, H=16, W=16)
    x = jax.random.normal(key, (2, 4, 16, 16), dtype=jnp.float32)

    # Case 1: leaky_relu with a kwarg (exercises the **kwargs path of the module)
    mod_lrelu = ActivationFunction(leaky_relu, negative_slope=0.2)
    y_lrelu = jax.block_until_ready(mod_lrelu(x))
    ref_lrelu = jnp.where(x >= 0, x, 0.2 * x)
    assert y_lrelu.shape == x.shape and y_lrelu.dtype == x.dtype
    assert jnp.allclose(y_lrelu, ref_lrelu, atol=1e-6, rtol=1e-6)

    # Case 2: GELU (tanh approximation) with no kwargs
    mod_gelu = ActivationFunction(gelu_tanh)
    y_gelu = jax.block_until_ready(mod_gelu(x))
    ref_gelu = jax.nn.gelu(x, approximate=True)
    assert jnp.allclose(y_gelu, ref_gelu, atol=1e-5, rtol=1e-5)

    # Case 3: ragged element count (exercises the tail-pad fallback path)
    x_ragged = jax.random.normal(jax.random.PRNGKey(1), (3, 5, 7), dtype=jnp.float32)
    mod_relu = ActivationFunction(relu)
    y_relu = jax.block_until_ready(mod_relu(x_ragged))
    assert y_relu.shape == x_ragged.shape
    assert jnp.allclose(y_relu, jnp.maximum(x_ragged, 0.0), atol=1e-6, rtol=1e-6)

    # Case 4: bf16 input (exercises the f32-upcast path inside the kernel)
    x_bf16 = jax.random.normal(jax.random.PRNGKey(2), (2, 4, 16, 16), jnp.bfloat16)
    y_bf16 = jax.block_until_ready(mod_gelu(x_bf16))
    ref_bf16 = jax.nn.gelu(x_bf16.astype(jnp.float32), approximate=True).astype(jnp.bfloat16)
    assert y_bf16.dtype == jnp.bfloat16
    assert jnp.allclose(y_bf16.astype(jnp.float32), ref_bf16.astype(jnp.float32),
                        atol=2e-2, rtol=2e-2)

    print("KERNEL_OK")
</pallas_src>

<mosaic_0001>
module attributes {stable_mosaic.version = 11 : i64} {
  func.func @_activation_kernel(%arg0: i32, %arg1: memref<1x2048xf32, #tpu.memory_space<vmem>>, %arg2: memref<1x2048xf32, #tpu.memory_space<vmem>>) attributes {dimension_semantics = [#tpu.dimension_semantics<parallel>], iteration_bounds = array<i64: 1>, scalar_prefetch = 0 : i64, scratch_operands = 0 : i64, tpu.core_type = #tpu.core_type<tc>, window_params = [{transform_indices = @transform_0, window_bounds = array<i64: 1, 2048>}, {transform_indices = @transform_1, window_bounds = array<i64: 1, 2048>}]} {
    %c0 = arith.constant 0 : index
    %c0_0 = arith.constant 0 : index
    %0 = vector.load %arg1[%c0, %c0_0] : memref<1x2048xf32, #tpu.memory_space<vmem>>, vector<1x2048xf32>
    %cst = arith.constant 0.000000e+00 : f32
    %1 = vector.broadcast %cst : f32 to vector<1x2048xf32>
    %2 = arith.cmpf oge, %0, %1 : vector<1x2048xf32>
    %cst_1 = arith.constant 2.000000e-01 : f32
    %3 = vector.broadcast %cst_1 : f32 to vector<1x2048xf32>
    %4 = arith.mulf %3, %0 : vector<1x2048xf32>
    %5 = arith.select %2, %0, %4 : vector<1x2048xi1>, vector<1x2048xf32>
    %c0_2 = arith.constant 0 : index
    %c0_3 = arith.constant 0 : index
    %6 = vector.load %arg2[%c0_2, %c0_3] : memref<1x2048xf32, #tpu.memory_space<vmem>>, vector<1x2048xf32>
    tpu.vector_store %arg2[%c0_2, %c0_3], %5 {strides = array<i32>} : memref<1x2048xf32, #tpu.memory_space<vmem>>, vector<1x2048xf32>,
    return
  }
  func.func @transform_0(%arg0: i32) -> (i32, i32) {
    %c0_i32 = arith.constant 0 : i32
    %c0_i32_0 = arith.constant 0 : i32
    return %arg0, %c0_i32 : i32, i32
  }
  func.func @transform_1(%arg0: i32) -> (i32, i32) {
    %c0_i32 = arith.constant 0 : i32
    %c0_i32_0 = arith.constant 0 : i32
    return %arg0, %c0_i32 : i32, i32
  }
}

</mosaic_0001>

<bundles_post_ra>
// kernel: _apply_activation_pallas.1
= control target key start
LH: loop header
LB: loop body
LE: loop exit
PB: predicated region body
PF: predicated region fallthrough
CT: control target
= control target key end

     0   :  { %s44_s0 = inlined_call_operand.vmem [shape: f32[1,2048], index: 0, kind: input, shape index: {}, may-alias: {0,1}]   ;;  %s45_s1 = inlined_call_operand.vmem [shape: f32[1,2048], index: 1, kind: output, shape index: {}, may-alias: {0,1}]  }
   0x1   :  { %v8_v0 = vld [vmem:[%s44_s0] sm:$0xff]  ;;  %v9_v1 = vld [vmem:[%s44_s0 + $0x8] sm:$0xff] }
   0x2   :  { %vm10_vm0 = vcmp.ge.f32.partialorder %v8_v0, 0.0  ;;  %v12_v2 = vmul.f32 0.2, %v8_v0  ;;  %vm11_vm1 = vcmp.ge.f32.partialorder %v9_v1, 0.0  ;;  %v13_v3 = vmul.f32 0.2, %v9_v1 }
   0x4   :  { %v14_v4 = vsel %vm10_vm0, %v8_v0, %v12_v2  ;;  %v15_v5 = vsel %vm11_vm1, %v9_v1, %v13_v3 }
   0x5   :  { %16 = vst [vmem:[%s45_s1] sm:$0xff] %v14_v4  ;;  %17 = vst [vmem:[%s45_s1 + $0x8] sm:$0xff] %v15_v5 }

</bundles_post_ra>
